<compile_context>
chip_gen: v5e
topology: v5e:2x2
jax: 0.10.0
libtpu: 0.0.40
codegen_flags: <defaults>
</compile_context>

<pallas_src>
import functools

import jax
import jax.numpy as jnp
from jax.experimental import pallas as pl
from jax.experimental.pallas import tpu as pltpu


def _round_up(x, m):
    return ((x + m - 1) // m) * m


def _auto_num_steps(n):
    """grid steps: 2 on v7x (2 TensorCores/chip), 1 on single-TC chips."""
    try:
        kind = jax.devices()[0].device_kind.lower()
    except Exception:  # pragma: no cover - defensive
        kind = ""
    if "v7" in kind and n >= 2 and n % 2 == 0:
        return 2
    return 1


def _fused_encoder_kernel(*refs, n_masks, layer_mask_idx, relus, shifts, sigmoid):
    """Runs the full conv stack for one batch-chunk, entirely on-chip.

    refs layout (inputs..., output):
      refs[0]                      : x      (1, Cin0, Lstep)   channel-first
      refs[1 : 1+n_masks]          : masks  (9*Cin_k, Lstep)   precomputed, 0/1
      refs[1+n_masks + 2*i]        : w_i    (Cout_i, 9*Cin_i)  flattened 3x3
      refs[1+n_masks + 2*i + 1]    : b_i    (Cout_i, 1)
      refs[-1]                     : out    (1, Cout_last, Lstep)
    """
    x_ref = refs[0]
    mask_refs = refs[1:1 + n_masks]
    o_ref = refs[-1]
    wb_refs = refs[1 + n_masks:-1]

    x = x_ref[0].astype(jnp.float32)                 # (Cin0, Lstep)
    L = x.shape[-1]

    for i, relu in enumerate(relus):
        w = wb_refs[2 * i][...].astype(jnp.float32)  # (Cout, 9*Cin)
        b = wb_refs[2 * i + 1][...].astype(jnp.float32)  # (Cout, 1)
        mask = mask_refs[layer_mask_idx[i]][...]     # (9*Cin, Lstep)

        # im2col via lane rotations (XLU): shifted[p] = x[p + s]; wrapped /
        # out-of-bounds / cross-image lanes are zeroed by the precomputed mask.
        taps = []
        for s in shifts:
            t = x if s == 0 else pltpu.roll(x, shift=(-s) % L, axis=1)
            taps.append(t)
        patches = jnp.concatenate(taps, axis=0) * mask   # (9*Cin, Lstep)

        y = jnp.dot(w, patches, preferred_element_type=jnp.float32) + b
        if relu:
            y = jnp.maximum(y, 0.0)
        x = y

    if sigmoid:
        x = jax.nn.sigmoid(x)
    o_ref[0] = x.astype(o_ref.dtype)


def encoder_forward(x_nchw, params, sigmoid, num_steps=None):
    """Fused forward.

    `params`: list of (w_flat (Cout, 9*Cin_pad), b (Cout, 1), relu) with
    w_flat column order (kh, kw, cin).
    """
    N, Cin, H, W = x_nchw.shape
    L = H * W
    if num_steps is None:
        num_steps = _auto_num_steps(N)
    G = num_steps if (num_steps >= 1 and N % num_steps == 0) else 1
    B = N // G
    Lstep = B * L

    cin0 = params[0][0].shape[1] // 9        # first-layer (padded) input chans
    x = x_nchw
    if cin0 > Cin:
        x = jnp.concatenate(
            [x, jnp.zeros((N, cin0 - Cin, H, W), x.dtype)], axis=1)
    # Fold B images per grid step onto the lane axis: (G, Cin0, B*H*W).
    x_folded = (x.reshape(G, B, cin0, L)
                 .transpose(0, 2, 1, 3)
                 .reshape(G, cin0, Lstep))

    # Grid-invariant boundary masks (hoisted out of the kernel).
    pos = jnp.arange(Lstep, dtype=jnp.int32)
    hw = pos % L
    hh = hw // W
    ww = hw % W
    shifts = []
    tap9 = []
    for kh in range(3):
        for kw in range(3):
            dh, dw = kh - 1, kw - 1
            shifts.append(dh * W + dw)
            tap9.append((hh + dh >= 0) & (hh + dh < H)
                        & (ww + dw >= 0) & (ww + dw < W))
    tap9 = jnp.stack(tap9).astype(jnp.float32)               # (9, Lstep)

    mask_idx = {}
    mask_ops = []
    layer_mask_idx = []
    relus = []
    wb_ops = []
    wb_specs = []
    for (w_flat, b_col, relu) in params:
        cout, k = w_flat.shape
        cin_l = k // 9
        if cin_l not in mask_idx:
            mask_idx[cin_l] = len(mask_ops)
            mask_ops.append(
                jnp.repeat(tap9[:, None, :], cin_l, axis=1)
                   .reshape(9 * cin_l, Lstep))
        layer_mask_idx.append(mask_idx[cin_l])
        relus.append(bool(relu))
        wb_ops += [w_flat, b_col]
        wb_specs += [pl.BlockSpec(w_flat.shape, lambda g: (0, 0)),
                     pl.BlockSpec(b_col.shape, lambda g: (0, 0))]

    c_last = params[-1][0].shape[0]

    in_specs = ([pl.BlockSpec((1, cin0, Lstep), lambda g: (g, 0, 0))]
                + [pl.BlockSpec(m.shape, lambda g: (0, 0)) for m in mask_ops]
                + wb_specs)
    operands = [x_folded] + mask_ops + wb_ops

    kernel = functools.partial(
        _fused_encoder_kernel,
        n_masks=len(mask_ops),
        layer_mask_idx=tuple(layer_mask_idx),
        relus=tuple(relus),
        shifts=tuple(shifts),
        sigmoid=bool(sigmoid))

    out = pl.pallas_call(
        kernel,
        out_shape=jax.ShapeDtypeStruct((G, c_last, Lstep), x_nchw.dtype),
        grid_spec=pltpu.PrefetchScalarGridSpec(
            num_scalar_prefetch=0,
            grid=(G,),
            in_specs=in_specs,
            out_specs=pl.BlockSpec((1, c_last, Lstep), lambda g: (g, 0, 0)),
        ),
        compiler_params=pltpu.CompilerParams(
            dimension_semantics=("parallel",)),
    )(*operands)

    return (out.reshape(G, c_last, B, L)
               .transpose(0, 2, 1, 3)
               .reshape(N, c_last, H, W))


class ReferenceEncoderPallas:
    """Pallas equivalent of ReferenceEncoder.

    `layers` is a list of dicts {'w': (3,3,Cin,Cout) HWIO, 'b': (1,Cout),
    'relu': bool}; each entry corresponds to a Conv2d(3x3, stride 1,
    padding 1) (+ReLU) pair of the PyTorch Sequential.  The whole stack plus
    the optional final sigmoid runs inside one fused pallas_call.
    """

    def __init__(self, layers, out_shape, sigmoid=False):
        self.out_shape = out_shape
        self.sigmoid = sigmoid
        self._params = []
        for idx, layer in enumerate(layers):
            w = layer['w']                                   # (3,3,Cin,Cout)
            kh, kw, cin, cout = w.shape
            assert (kh, kw) == (3, 3), "only 3x3 convs supported"
            # Pad the first layer's input channels to a multiple of 8 so each
            # im2col tap tile is a full sublane slab (zero columns are exact).
            cin_pad = _round_up(cin, 8) if idx == 0 else cin
            if cin_pad > cin:
                w = jnp.pad(w, ((0, 0), (0, 0), (0, cin_pad - cin), (0, 0)))
            # (Cout, 9*Cin_pad), column index = (kh*3+kw)*Cin_pad + cin
            w_flat = jnp.transpose(w.reshape(kh * kw * cin_pad, cout))
            b_col = layer['b'].reshape(cout, 1)
            self._params.append((w_flat, b_col, bool(layer['relu'])))

    def __call__(self, x_nchw):
        last = encoder_forward(x_nchw, self._params, self.sigmoid)
        return {'last': last}


def _reference_forward(x_nchw, layers, sigmoid):
    """Pure-JAX reference (mirrors the PyTorch forward) for validation."""
    x = x_nchw
    for layer in layers:
        w_oihw = jnp.transpose(layer['w'], (3, 2, 0, 1))     # HWIO -> OIHW
        x = jax.lax.conv_general_dilated(
            x, w_oihw, window_strides=(1, 1), padding='SAME',
            dimension_numbers=('NCHW', 'OIHW', 'NCHW'))
        x = x + layer['b'][0][None, :, None, None]
        if layer['relu']:
            x = jnp.maximum(x, 0.0)
    if sigmoid:
        x = jax.nn.sigmoid(x)
    return {'last': x}


if __name__ == "__main__":
    key = jax.random.PRNGKey(0)
    kx, kw1, kb1, kw2, kb2 = jax.random.split(key, 5)

    N, Cin, H, W = 2, 4, 16, 16
    C1, C2 = 8, 16

    x = jax.random.normal(kx, (N, Cin, H, W), jnp.float32)

    def init_conv(k_w, k_b, cin, cout):
        # PyTorch Conv2d default init: U(-sqrt(k), sqrt(k)), k = 1/(cin*3*3)
        fan_in = cin * 3 * 3
        bound = (1.0 / fan_in) ** 0.5
        w = jax.random.uniform(k_w, (3, 3, cin, cout), jnp.float32, -bound, bound)
        b = jax.random.uniform(k_b, (1, cout), jnp.float32, -bound, bound)
        return w, b

    w1, b1 = init_conv(kw1, kb1, Cin, C1)
    w2, b2 = init_conv(kw2, kb2, C1, C2)

    layers = [
        {'w': w1, 'b': b1, 'relu': True},   # Conv2d(4, 8, 3, padding=1) + ReLU
        {'w': w2, 'b': b2, 'relu': True},   # Conv2d(8, 16, 3, padding=1) + ReLU
    ]

    encoder = ReferenceEncoderPallas(layers, out_shape=(C2, H, W), sigmoid=True)

    out = encoder(x)
    last = jax.block_until_ready(out['last'])
    assert last.shape == (N, C2, H, W), last.shape

    # Validate against a pure-JAX reference of the same forward pass.
    ref = _reference_forward(x, layers, sigmoid=True)['last']
    if not jnp.allclose(last, ref, atol=3e-5, rtol=3e-5):
        err = jnp.max(jnp.abs(last - ref))
        raise AssertionError(f"Pallas output does not match reference (max err {err})")

    print("KERNEL_OK")
</pallas_src>

<mosaic_0001>
module attributes {stable_mosaic.version = 11 : i64} {
  func.func @_fused_encoder_kernel(%arg0: i32, %arg1: memref<1x8x512xf32, #tpu.memory_space<vmem>>, %arg2: memref<72x512xf32, #tpu.memory_space<vmem>>, %arg3: memref<8x72xf32, #tpu.memory_space<vmem>>, %arg4: memref<8x1xf32, #tpu.memory_space<vmem>>, %arg5: memref<16x72xf32, #tpu.memory_space<vmem>>, %arg6: memref<16x1xf32, #tpu.memory_space<vmem>>, %arg7: memref<1x16x512xf32, #tpu.memory_space<vmem>>) attributes {dimension_semantics = [#tpu.dimension_semantics<parallel>], iteration_bounds = array<i64: 1>, scalar_prefetch = 0 : i64, scratch_operands = 0 : i64, tpu.core_type = #tpu.core_type<tc>, window_params = [{transform_indices = @transform_0, window_bounds = array<i64: 1, 8, 512>}, {pipeline_mode = #tpu.pipeline_mode<synchronous>, transform_indices = @transform_1, window_bounds = array<i64: 72, 512>}, {pipeline_mode = #tpu.pipeline_mode<synchronous>, transform_indices = @transform_2, window_bounds = array<i64: 8, 72>}, {pipeline_mode = #tpu.pipeline_mode<synchronous>, transform_indices = @transform_3, window_bounds = array<i64: 8, 1>}, {pipeline_mode = #tpu.pipeline_mode<synchronous>, transform_indices = @transform_4, window_bounds = array<i64: 16, 72>}, {pipeline_mode = #tpu.pipeline_mode<synchronous>, transform_indices = @transform_5, window_bounds = array<i64: 16, 1>}, {transform_indices = @transform_6, window_bounds = array<i64: 1, 16, 512>}]} {
    %c0 = arith.constant 0 : index
    %c0_0 = arith.constant 0 : index
    %c0_1 = arith.constant 0 : index
    %0 = vector.load %arg1[%c0, %c0_0, %c0_1] : memref<1x8x512xf32, #tpu.memory_space<vmem>>, vector<1x8x512xf32>
    %1 = vector.shape_cast %0 : vector<1x8x512xf32> to vector<8x512xf32>
    %c0_2 = arith.constant 0 : index
    %c0_3 = arith.constant 0 : index
    %2 = vector.load %arg3[%c0_2, %c0_3] : memref<8x72xf32, #tpu.memory_space<vmem>>, vector<8x72xf32>
    %c0_4 = arith.constant 0 : index
    %c0_5 = arith.constant 0 : index
    %3 = vector.load %arg4[%c0_4, %c0_5] : memref<8x1xf32, #tpu.memory_space<vmem>>, vector<8x1xf32>
    %c0_6 = arith.constant 0 : index
    %c0_7 = arith.constant 0 : index
    %4 = vector.load %arg2[%c0_6, %c0_7] : memref<72x512xf32, #tpu.memory_space<vmem>>, vector<72x512xf32>
    %c17_i32 = arith.constant 17 : i32
    %5 = tpu.dynamic_rotate %1 by %c17_i32 dim 1 : vector<8x512xf32>, i32 -> vector<8x512xf32>
    %c16_i32 = arith.constant 16 : i32
    %6 = tpu.dynamic_rotate %1 by %c16_i32 dim 1 : vector<8x512xf32>, i32 -> vector<8x512xf32>
    %c15_i32 = arith.constant 15 : i32
    %7 = tpu.dynamic_rotate %1 by %c15_i32 dim 1 : vector<8x512xf32>, i32 -> vector<8x512xf32>
    %c1_i32 = arith.constant 1 : i32
    %8 = tpu.dynamic_rotate %1 by %c1_i32 dim 1 : vector<8x512xf32>, i32 -> vector<8x512xf32>
    %c511_i32 = arith.constant 511 : i32
    %9 = tpu.dynamic_rotate %1 by %c511_i32 dim 1 : vector<8x512xf32>, i32 -> vector<8x512xf32>
    %c497_i32 = arith.constant 497 : i32
    %10 = tpu.dynamic_rotate %1 by %c497_i32 dim 1 : vector<8x512xf32>, i32 -> vector<8x512xf32>
    %c496_i32 = arith.constant 496 : i32
    %11 = tpu.dynamic_rotate %1 by %c496_i32 dim 1 : vector<8x512xf32>, i32 -> vector<8x512xf32>
    %c495_i32 = arith.constant 495 : i32
    %12 = tpu.dynamic_rotate %1 by %c495_i32 dim 1 : vector<8x512xf32>, i32 -> vector<8x512xf32>
    %13 = tpu.concatenate %5, %6, %7, %8, %1, %9, %10, %11, %12 in 0 : vector<8x512xf32>, vector<8x512xf32>, vector<8x512xf32>, vector<8x512xf32>, vector<8x512xf32>, vector<8x512xf32>, vector<8x512xf32>, vector<8x512xf32>, vector<8x512xf32> -> vector<72x512xf32>
    %14 = arith.mulf %13, %4 : vector<72x512xf32>
    %cst = arith.constant dense<0.000000e+00> : vector<8x512xf32>
    %15 = tpu.matmul %2, %14, %cst {dimension_numbers = #tpu.dot_dimension_numbers<[1], [0], [0], [1], [0, 0, 1, 1], [], []>} : vector<8x72xf32>, vector<72x512xf32>, vector<8x512xf32> -> vector<8x512xf32>
    %16 = vector.broadcast %3 : vector<8x1xf32> to vector<8x512xf32>
    %17 = arith.addf %15, %16 : vector<8x512xf32>
    %cst_8 = arith.constant 0.000000e+00 : f32
    %18 = vector.broadcast %cst_8 : f32 to vector<8x512xf32>
    %19 = arith.maximumf %17, %18 : vector<8x512xf32>
    %c0_9 = arith.constant 0 : index
    %c0_10 = arith.constant 0 : index
    %20 = vector.load %arg5[%c0_9, %c0_10] : memref<16x72xf32, #tpu.memory_space<vmem>>, vector<16x72xf32>
    %c0_11 = arith.constant 0 : index
    %c0_12 = arith.constant 0 : index
    %21 = vector.load %arg6[%c0_11, %c0_12] : memref<16x1xf32, #tpu.memory_space<vmem>>, vector<16x1xf32>
    %c0_13 = arith.constant 0 : index
    %c0_14 = arith.constant 0 : index
    %22 = vector.load %arg2[%c0_13, %c0_14] : memref<72x512xf32, #tpu.memory_space<vmem>>, vector<72x512xf32>
    %c17_i32_15 = arith.constant 17 : i32
    %23 = tpu.dynamic_rotate %19 by %c17_i32_15 dim 1 : vector<8x512xf32>, i32 -> vector<8x512xf32>
    %c16_i32_16 = arith.constant 16 : i32
    %24 = tpu.dynamic_rotate %19 by %c16_i32_16 dim 1 : vector<8x512xf32>, i32 -> vector<8x512xf32>
    %c15_i32_17 = arith.constant 15 : i32
    %25 = tpu.dynamic_rotate %19 by %c15_i32_17 dim 1 : vector<8x512xf32>, i32 -> vector<8x512xf32>
    %c1_i32_18 = arith.constant 1 : i32
    %26 = tpu.dynamic_rotate %19 by %c1_i32_18 dim 1 : vector<8x512xf32>, i32 -> vector<8x512xf32>
    %c511_i32_19 = arith.constant 511 : i32
    %27 = tpu.dynamic_rotate %19 by %c511_i32_19 dim 1 : vector<8x512xf32>, i32 -> vector<8x512xf32>
    %c497_i32_20 = arith.constant 497 : i32
    %28 = tpu.dynamic_rotate %19 by %c497_i32_20 dim 1 : vector<8x512xf32>, i32 -> vector<8x512xf32>
    %c496_i32_21 = arith.constant 496 : i32
    %29 = tpu.dynamic_rotate %19 by %c496_i32_21 dim 1 : vector<8x512xf32>, i32 -> vector<8x512xf32>
    %c495_i32_22 = arith.constant 495 : i32
    %30 = tpu.dynamic_rotate %19 by %c495_i32_22 dim 1 : vector<8x512xf32>, i32 -> vector<8x512xf32>
    %31 = tpu.concatenate %23, %24, %25, %26, %19, %27, %28, %29, %30 in 0 : vector<8x512xf32>, vector<8x512xf32>, vector<8x512xf32>, vector<8x512xf32>, vector<8x512xf32>, vector<8x512xf32>, vector<8x512xf32>, vector<8x512xf32>, vector<8x512xf32> -> vector<72x512xf32>
    %32 = arith.mulf %31, %22 : vector<72x512xf32>
    %cst_23 = arith.constant dense<0.000000e+00> : vector<16x512xf32>
    %33 = tpu.matmul %20, %32, %cst_23 {dimension_numbers = #tpu.dot_dimension_numbers<[1], [0], [0], [1], [0, 0, 1, 1], [], []>} : vector<16x72xf32>, vector<72x512xf32>, vector<16x512xf32> -> vector<16x512xf32>
    %34 = vector.broadcast %21 : vector<16x1xf32> to vector<16x512xf32>
    %35 = arith.addf %33, %34 : vector<16x512xf32>
    %cst_24 = arith.constant 0.000000e+00 : f32
    %36 = vector.broadcast %cst_24 : f32 to vector<16x512xf32>
    %37 = arith.maximumf %35, %36 : vector<16x512xf32>
    %38 = arith.negf %37 : vector<16x512xf32>
    %39 = math.exp %38 : vector<16x512xf32>
    %cst_25 = arith.constant 1.000000e+00 : f32
    %40 = vector.broadcast %cst_25 : f32 to vector<16x512xf32>
    %41 = arith.addf %40, %39 : vector<16x512xf32>
    %42 = arith.divf %40, %41 : vector<16x512xf32>
    %c0_26 = arith.constant 0 : index
    %c0_27 = arith.constant 0 : index
    %c0_28 = arith.constant 0 : index
    %43 = vector.load %arg7[%c0_26, %c0_27, %c0_28] : memref<1x16x512xf32, #tpu.memory_space<vmem>>, vector<1x16x512xf32>
    %44 = vector.shape_cast %43 : vector<1x16x512xf32> to vector<16x512xf32>
    %45 = vector.shape_cast %42 : vector<16x512xf32> to vector<1x16x512xf32>
    tpu.vector_store %arg7[%c0_26, %c0_27, %c0_28], %45 {strides = array<i32>} : memref<1x16x512xf32, #tpu.memory_space<vmem>>, vector<1x16x512xf32>,
    return
  }
  func.func @transform_0(%arg0: i32) -> (i32, i32, i32) {
    %c0_i32 = arith.constant 0 : i32
    %c0_i32_0 = arith.constant 0 : i32
    %c0_i32_1 = arith.constant 0 : i32
    return %arg0, %c0_i32, %c0_i32_0 : i32, i32, i32
  }
  func.func @transform_1(%arg0: i32) -> (i32, i32) {
    %c0_i32 = arith.constant 0 : i32
    %c0_i32_0 = arith.constant 0 : i32
    %c0_i32_1 = arith.constant 0 : i32
    return %c0_i32, %c0_i32_0 : i32, i32
  }
  func.func @transform_2(%arg0: i32) -> (i32, i32) {
    %c0_i32 = arith.constant 0 : i32
    %c0_i32_0 = arith.constant 0 : i32
    %c0_i32_1 = arith.constant 0 : i32
    return %c0_i32, %c0_i32_0 : i32, i32
  }
  func.func @transform_3(%arg0: i32) -> (i32, i32) {
    %c0_i32 = arith.constant 0 : i32
    %c0_i32_0 = arith.constant 0 : i32
    %c0_i32_1 = arith.constant 0 : i32
    return %c0_i32, %c0_i32_0 : i32, i32
  }
  func.func @transform_4(%arg0: i32) -> (i32, i32) {
    %c0_i32 = arith.constant 0 : i32
    %c0_i32_0 = arith.constant 0 : i32
    %c0_i32_1 = arith.constant 0 : i32
    return %c0_i32, %c0_i32_0 : i32, i32
  }
  func.func @transform_5(%arg0: i32) -> (i32, i32) {
    %c0_i32 = arith.constant 0 : i32
    %c0_i32_0 = arith.constant 0 : i32
    %c0_i32_1 = arith.constant 0 : i32
    return %c0_i32, %c0_i32_0 : i32, i32
  }
  func.func @transform_6(%arg0: i32) -> (i32, i32, i32) {
    %c0_i32 = arith.constant 0 : i32
    %c0_i32_0 = arith.constant 0 : i32
    %c0_i32_1 = arith.constant 0 : i32
    return %arg0, %c0_i32, %c0_i32_0 : i32, i32, i32
  }
}

</mosaic_0001>

<bundles_post_ra>
// kernel: tpu_custom_call.1
= control target key start
LH: loop header
LB: loop body
LE: loop exit
PB: predicated region body
PF: predicated region fallthrough
CT: control target
= control target key end

     0   :  { %11 = vsyncpa [#allocation3], 0  ;;  %s1534_s0 = inlined_call_operand.hbm [shape: f32[1,8,512], index: 0, kind: input, shape index: {}]   ;;  %s1535_s1 = inlined_call_operand.hbm [shape: f32[72,512], index: 1, kind: input, shape index: {}]   ;;  %s1536_s2 = inlined_call_operand.vmem [shape: f32[8,72], index: 2, kind: input, shape index: {}]   ;;  %s1537_s3 = inlined_call_operand.vmem [shape: f32[8,1], index: 3, kind: input, shape index: {}]   ;;  %s1538_s4 = inlined_call_operand.vmem [shape: f32[16,72], index: 4, kind: input, shape index: {}]   ;;  %s1539_s5 = inlined_call_operand.vmem [shape: f32[16,1], index: 5, kind: input, shape index: {}]   ;;  %s1540_s6 = inlined_call_operand.hbm [shape: f32[1,16,512], index: 6, kind: output, shape index: {}]  }
   0x1   :  { %12 = vsyncpa [#allocation6], 0 }
   0x2   :  { %13 = vsyncpa [#allocation4], 0  ;;  %s19_s23 = sshll.u32 %s1534_s0, 4  ;;  %s909_s24 = smov [#allocation2]   ;;  %s20_s23 = int_to_ptr.hbm [resolvable:$true] %s19_s23 }
   0x3   :  { %s21_s25 = sshll.u32 %s909_s24, 4  ;;  %s29_s28 = sshll.u32 %s1535_s1, 4  ;;  %s22_s25 = int_to_ptr.vmem [resolvable:$true] %s21_s25  ;;  %s30_s28 = int_to_ptr.hbm [resolvable:$true] %s29_s28 }
   0x4   :  { %24 = dma.hbm_to_vmem [thread:$0]  %s20_s23, 512, %s22_s25, [#allocation3]  }
   0x5   :  { %s910_s29 = smov [#allocation5]   ;;  %s911_s7 = smov 512  }
   0x6   :  { %s31_s30 = sshll.u32 %s910_s29, 4  ;;  %s912_s8 = smov 32   ;;  %s32_s30 = int_to_ptr.vmem [resolvable:$true] %s31_s30 }
   0x7   :  { %37 = dma.hbm_to_vmem [thread:$0]  %s30_s28, 4608, %s32_s30, [#allocation6], %s911_s7, %s911_s7, %s912_s8  }
   0x8   :  { %903 = dma.done.wait [#allocation3], 512  }
   0x9   :  { %904 = vsyncadd [#allocation3], 4294966784 }
   0xa   :  { %905 = dma.done.wait [#allocation6], 4608  }
   0xb   :  { %906 = vsyncadd [#allocation6], 4294962688  ;;  %v967_v0 = vld [vmem:[#allocation2 + $0x18] sm:$0xff]  ;;  %v969_v1 = vld [vmem:[#allocation2 + $0x10] sm:$0xff]  ;;  %s913_s0 = smov 111   ;;  %s914_s1 = smov 112   ;;  %v104_v6 = vlaneseq }
   0xc   :  { %v971_v2 = vld [vmem:[#allocation2] sm:$0xff]  ;;  %195 = vrot.lane.b32.xlu1 %v967_v0, %s913_s0  ;;  %180 = vrot.lane.b32.xlu2 %v969_v1, %s914_s1  ;;  %s915_s9 = smov 113   ;;  %s916_s10 = smov 127   ;;  %v997_v3 = vld [vmem:[#allocation2 + $0x8] sm:$0xff]  ;;  %v1044_v10 = vld [vmem:[#allocation5 + $0x118] sm:$0xff]  ;;  %vm243_vm8 = vcmask 588800  }
   0xd   :  { %189 = vrot.lane.b32.xlu0 %v971_v2, %s913_s0  ;;  %s917_s11 = smov 1   ;;  %s918_s12 = smov 15   ;;  %v1041_v7 = vand.u32 127, %v104_v6  ;;  %v1050_v14 = vld [vmem:[#allocation5 + $0xf8] sm:$0xff]  ;;  %v1052_v16 = vld [vmem:[#allocation5 + $0x110] sm:$0xff]  ;;  %v1104_v49 = vld [vmem:[#allocation5 + $0x100] sm:$0xff] }
   0xe   :  { %s919_s13 = smov 16   ;;  %s920_s14 = smov 17   ;;  %v1061_v22 = vld [vmem:[#allocation5 + $0xf0] sm:$0xff]  ;;  %v1069_v28 = vld [vmem:[#allocation5 + $0xd8] sm:$0xff]  ;;  %v1106_v50 = vld [vmem:[#allocation5 + $0x108] sm:$0xff] }
   0xf   :  { %vm197_vm0 = vcmp.lt.s32.totalorder %v1041_v7, 111  ;;  %vm184_vm1 = vcmp.lt.s32.totalorder %v1041_v7, 112  ;;  %vm171_vm2 = vcmp.lt.s32.totalorder %v1041_v7, 113  ;;  %v1067_v26 = vld [vmem:[#allocation5 + $0xd0] sm:$0xff]  ;;  %vm158_vm3 = vcmp.lt.s32.totalorder %v1041_v7, 127  ;;  %v1086_v38 = vld [vmem:[#allocation5 + $0xb8] sm:$0xff] }
  0x10   :  { %v1080_v35 = vld [vmem:[#allocation5 + $0xb0] sm:$0xff]  ;;  %v1088_v39 = vld [vmem:[#allocation5 + $0x98] sm:$0xff]  ;;  %v1117_v56 = vld [vmem:[#allocation5 + $0xe0] sm:$0xff]  ;;  %vm145_vm4 = vcmp.lt.s32.totalorder %v1041_v7, 1  ;;  %vm132_vm5 = vcmp.lt.s32.totalorder %v1041_v7, 15  ;;  %vm119_vm6 = vcmp.lt.s32.totalorder %v1041_v7, 16 }
  0x11   :  { %v1082_v36 = vld [vmem:[#allocation5 + $0x90] sm:$0xff]  ;;  %v221_v46 = vmul.f32 %v1088_v39, %v967_v0  ;;  %v1119_v57 = vld [vmem:[#allocation5 + $0xe8] sm:$0xff]  ;;  %v1127_v62 = vld [vmem:[#allocation5 + $0xc0] sm:$0xff]  ;;  %vm106_vm7 = vcmp.lt.s32.totalorder %v1041_v7, 17  ;;  %s749_s27 = sshll.u32 %s1540_s6, 4  ;;  %s750_s27 = int_to_ptr.hbm [resolvable:$true] %s749_s27 }
  0x12   :  { %v220_v44 = vmul.f32 %v1082_v36, %v969_v1  ;;  %v1129_v63 = vld [vmem:[#allocation5 + $0xc8] sm:$0xff] }
  0x14   :  { %182 = vrot.lane.b32.xlu2 %v967_v0, %s914_s1  ;;  %176 = vrot.lane.b32.xlu1 %v971_v2, %s914_s1 }
  0x15   :  { %193 = vrot.lane.b32.xlu0 %v969_v1, %s913_s0 }
  0x1c   :  { %169 = vrot.lane.b32.xlu2 %v967_v0, %s915_s9  ;;  %167 = vrot.lane.b32.xlu1 %v969_v1, %s915_s9 }
  0x1d   :  { %163 = vrot.lane.b32.xlu0 %v971_v2, %s915_s9 }
  0x24   :  { %156 = vrot.lane.b32.xlu2 %v967_v0, %s916_s10  ;;  %154 = vrot.lane.b32.xlu1 %v969_v1, %s916_s10 }
  0x25   :  { %150 = vrot.lane.b32.xlu0 %v971_v2, %s916_s10 }
  0x2c   :  { %139 = vrot.lane.b32.xlu2 %v997_v3, %s917_s11  ;;  %178 = vrot.lane.b32.xlu1 %v997_v3, %s914_s1 }
  0x2d   :  { %191 = vrot.lane.b32.xlu0 %v997_v3, %s913_s0 }
  0x34   :  { %165 = vrot.lane.b32.xlu2 %v997_v3, %s915_s9  ;;  %143 = vrot.lane.b32.xlu1 %v967_v0, %s917_s11 }
  0x35   :  { %141 = vrot.lane.b32.xlu0 %v969_v1, %s917_s11 }
  0x3c   :  { %130 = vrot.lane.b32.xlu2 %v967_v0, %s918_s12  ;;  %128 = vrot.lane.b32.xlu1 %v969_v1, %s918_s12 }
  0x3d   :  { %126 = vrot.lane.b32.xlu0 %v997_v3, %s918_s12 }
  0x44   :  { %115 = vrot.lane.b32.xlu2 %v969_v1, %s919_s13  ;;  %113 = vrot.lane.b32.xlu1 %v997_v3, %s919_s13 }
  0x45   :  { %152 = vrot.lane.b32.xlu0 %v997_v3, %s916_s10 }
  0x4c   :  { %100 = vrot.lane.b32.xlu2 %v969_v1, %s920_s14  ;;  %98 = vrot.lane.b32.xlu1 %v997_v3, %s920_s14 }
  0x4d   :  { %117 = vrot.lane.b32.xlu0 %v967_v0, %s919_s13 }
  0x54   :  { %124 = vrot.lane.b32.xlu2 %v971_v2, %s918_s12  ;;  %137 = vrot.lane.b32.xlu1 %v971_v2, %s917_s11 }
  0x55   :  { %102 = vrot.lane.b32.xlu0 %v967_v0, %s920_s14 }
  0x5c   :  { %96 = vrot.lane.b32.xlu1 %v971_v2, %s920_s14 }
  0x5d   :  { %111 = vrot.lane.b32.xlu0 %v971_v2, %s919_s13 }
  0x66   :  { %v1039_v4 = vpop.permute.xlu2 %180 }
  0x6e   :  { %v183_v5 = vpop.permute.xlu2 %182 }
  0x6f   :  { %v185_v19 = vsel %vm184_vm1, %v1039_v4, %v183_v5 }
  0x70   :  { %v232_v25 = vmul.f32 %v185_v19, %v1061_v22  ;;  %v1153_v19 = vld [vmem:[#allocation5 + $0x58] sm:$0xff] }
  0x76   :  { %v170_v8 = vpop.permute.xlu2 %169 }
  0x7e   :  { %v196_v9 = vpop.permute.xlu1 %195  ;;  %v157_v20 = vpop.permute.xlu2 %156 }
  0x7f   :  { %v190_v11 = vpop.permute.xlu0 %189 }
  0x80   :  { %v201_v12 = vsel %vm197_vm0, %v196_v9, %v190_v11 }
  0x81   :  { %v237_v13 = vmul.f32 %v201_v12, %v1044_v10 }
  0x83   :  { %314 = vmatpush.msra.mxu3 %v237_v13 }
  0x86   :  { %v177_v15 = vpop.permute.xlu1 %176  ;;  %v1077_v34 = vpop.permute.xlu2 %139 }
  0x87   :  { %v188_v17 = vsel %vm184_vm1, %v183_v5, %v177_v15  ;;  %v194_v18 = vpop.permute.xlu0 %193 }
  0x88   :  { %v198_v21 = vsel %vm197_vm0, %v194_v18, %v196_v9  ;;  %v233_v23 = vmul.f32 %v188_v17, %v1050_v14  ;;  %v1140_v9 = vld [vmem:[#allocation5 + $0x70] sm:$0xff] }
  0x89   :  { %v236_v24 = vmul.f32 %v198_v21, %v1052_v16  ;;  %v1155_v21 = vld [vmem:[#allocation5 + $0x50] sm:$0xff] }
  0x8a   :  { %315 = vmatpush.msra.mxu3 %v233_v23 }
  0x8b   :  { %294 = vmatpush.msra.mxu2 %v236_v24 }
  0x8d   :  { %295 = vmatpush.msra.mxu2 %v232_v25 }
  0x8e   :  { %v168_v27 = vpop.permute.xlu1 %167  ;;  %v166_v47 = vpop.permute.xlu2 %165 }
  0x8f   :  { %v172_v29 = vsel %vm171_vm2, %v168_v27, %v170_v8  ;;  %v164_v30 = vpop.permute.xlu0 %163  ;;  %v173_v60 = vsel %vm171_vm2, %v166_v47, %v168_v27 }
  0x90   :  { %v175_v31 = vsel %vm171_vm2, %v170_v8, %v164_v30  ;;  %v228_v32 = vmul.f32 %v172_v29, %v1067_v26  ;;  %v174_v61 = vsel %vm171_vm2, %v164_v30, %v166_v47  ;;  %v227_v5 = vmul.f32 %v173_v60, %v1129_v63  ;;  %v1199_v60 = vld [vmem:[#allocation5 + $0x38] sm:$0xff] }
  0x91   :  { %v229_v33 = vmul.f32 %v175_v31, %v1069_v28  ;;  %v1165_v31 = vld [vmem:[#allocation5 + $0xa0] sm:$0xff]  ;;  %v921_v47 = vmov 0  }
  0x92   :  { %296 = vmatpush.msra.mxu2 %v228_v32  ;;  %v1167_v32 = vld [vmem:[#allocation5 + $0xa8] sm:$0xff]  ;;  %797 = vset.pattern.permute.xlu2 %v921_v47 }
  0x93   :  { %316 = vmatpush.msra.mxu3 %v229_v33  ;;  %v1169_v33 = vld [vmem:[#allocation5 + $0x30] sm:$0xff]  ;;  %798 = vset.pattern.permute.xlu0 %v921_v47  ;;  %v1240_v47 = vld [vmem:[#allocation5 + $0x20] sm:$0xff] }
  0x96   :  { %v1084_v37 = vpop.permute.xlu1 %154  ;;  %v1136_v6 = vpop.permute.xlu2 %130 }
  0x97   :  { %v159_v40 = vsel %vm158_vm3, %v1084_v37, %v157_v20  ;;  %v1093_v41 = vpop.permute.xlu0 %150 }
  0x98   :  { %v162_v42 = vsel %vm158_vm3, %v157_v20, %v1093_v41  ;;  %v224_v43 = vmul.f32 %v159_v40, %v1080_v35 }
  0x99   :  { %v225_v45 = vmul.f32 %v162_v42, %v1086_v38  ;;  %v1173_v42 = vld [vmem:[#allocation5 + $0x80] sm:$0xff] }
  0x9a   :  { %297 = vmatpush.msra.mxu2 %v224_v43  ;;  %v1175_v43 = vld [vmem:[#allocation5 + $0x88] sm:$0xff] }
  0x9b   :  { %317 = vmatpush.msra.mxu3 %v225_v45 }
  0x9c   :  { %298 = vmatpush.msra.mxu2 %v220_v44  ;;  %v59_v44 = vld [vmem:[%s1537_s3] sm:$0xff] }
  0x9d   :  { %318 = vmatpush.msra.mxu3 %v221_v46  ;;  %240 = vperm.xlu2 %797, %v59_v44  }
  0x9e   :  { %v179_v48 = vpop.permute.xlu1 %178  ;;  %v116_v25 = vpop.permute.xlu2 %115 }
  0x9f   :  { %v192_v51 = vpop.permute.xlu0 %191  ;;  %v186_v52 = vsel %vm184_vm1, %v179_v48, %v1039_v4  ;;  %v187_v53 = vsel %vm184_vm1, %v177_v15, %v179_v48  ;;  %v226_v4 = vmul.f32 %v174_v61, %v1127_v62 }
  0xa0   :  { %v200_v54 = vsel %vm197_vm0, %v190_v11, %v192_v51  ;;  %v199_v55 = vsel %vm197_vm0, %v192_v51, %v194_v18  ;;  %v230_v0 = vmul.f32 %v187_v53, %v1117_v56  ;;  %v231_v1 = vmul.f32 %v186_v52, %v1119_v57  ;;  %v1142_v11 = vld [vmem:[#allocation5 + $0x78] sm:$0xff] }
  0xa1   :  { %v234_v58 = vmul.f32 %v200_v54, %v1104_v49  ;;  %v235_v59 = vmul.f32 %v199_v55, %v1106_v50  ;;  %v218_v55 = vmul.f32 %v1173_v42, %v971_v2 }
  0xa3   :  { %254 = vmatpush.msra.mxu0 %v234_v58  ;;  %274 = vmatpush.msra.mxu1 %v235_v59  ;;  %v219_v58 = vmul.f32 %v1175_v43, %v997_v3 }
  0xa5   :  { %255 = vmatpush.msra.mxu0 %v230_v0  ;;  %275 = vmatpush.msra.mxu1 %v231_v1  ;;  %v58_v1 = vld [vmem:[%s1536_s2] sm:$0xff] }
  0xa6   :  { %v1138_v8 = vpop.permute.xlu1 %143  ;;  %v101_v59 = vpop.permute.xlu2 %100 }
  0xa7   :  { %256 = vmatpush.msra.mxu0 %v226_v4  ;;  %276 = vmatpush.msra.mxu1 %v227_v5  ;;  %v142_v12 = vpop.permute.xlu0 %141 }
  0xa8   :  { %v146_v13 = vsel %vm145_vm4, %v142_v12, %v1138_v8  ;;  %v147_v15 = vsel %vm145_vm4, %v1077_v34, %v142_v12  ;;  %v1211_v12 = vld [vmem:[#allocation5 + $0x60] sm:$0xff] }
  0xa9   :  { %v216_v17 = vmul.f32 %v147_v15, %v1140_v9  ;;  %v217_v18 = vmul.f32 %v146_v13, %v1142_v11  ;;  %v1213_v13 = vld [vmem:[#allocation5 + $0x68] sm:$0xff] }
  0xab   :  { %299 = vmatpush.msra.mxu2 %v216_v17  ;;  %319 = vmatpush.msra.mxu3 %v217_v18  ;;  %v1215_v17 = vld [vmem:[#allocation5 + $0x18] sm:$0xff] }
  0xae   :  { %v129_v20 = vpop.permute.xlu1 %128  ;;  %v125_v5 = vpop.permute.xlu2 %124 }
  0xaf   :  { %v133_v23 = vsel %vm132_vm5, %v129_v20, %v1136_v6  ;;  %v127_v24 = vpop.permute.xlu0 %126  ;;  %v136_v18 = vsel %vm132_vm5, %v1136_v6, %v125_v5 }
  0xb0   :  { %v134_v27 = vsel %vm132_vm5, %v127_v24, %v129_v20  ;;  %v213_v29 = vmul.f32 %v133_v23, %v1153_v19  ;;  %v135_v20 = vsel %vm132_vm5, %v125_v5, %v127_v24 }
  0xb1   :  { %v212_v30 = vmul.f32 %v134_v27, %v1155_v21 }
  0xb2   :  { %320 = vmatpush.msra.mxu3 %v213_v29  ;;  %v1228_v29 = vld [vmem:[#allocation5 + $0x40] sm:$0xff] }
  0xb3   :  { %300 = vmatpush.msra.mxu2 %v212_v30  ;;  %v1230_v30 = vld [vmem:[#allocation5 + $0x48] sm:$0xff] }
  0xb6   :  { %v1171_v40 = vpop.permute.xlu1 %113 }
  0xb7   :  { %v121_v45 = vsel %vm119_vm6, %v1171_v40, %v116_v25  ;;  %v153_v46 = vpop.permute.xlu0 %152 }
  0xb8   :  { %v160_v48 = vsel %vm158_vm3, %v153_v46, %v1084_v37  ;;  %v161_v51 = vsel %vm158_vm3, %v1093_v41, %v153_v46  ;;  %v208_v52 = vmul.f32 %v121_v45, %v1169_v33  ;;  %v1197_v37 = vld [vmem:[#allocation5 + $0x10] sm:$0xff] }
  0xb9   :  { %v222_v53 = vmul.f32 %v161_v51, %v1165_v31  ;;  %v223_v54 = vmul.f32 %v160_v48, %v1167_v32  ;;  %v1242_v48 = vld [vmem:[#allocation5 + $0x28] sm:$0xff] }
  0xba   :  { %301 = vmatpush.msra.mxu2 %v208_v52 }
  0xbb   :  { %257 = vmatpush.msra.mxu0 %v222_v53  ;;  %277 = vmatpush.msra.mxu1 %v223_v54 }
  0xbd   :  { %258 = vmatpush.msra.mxu0 %v218_v55  ;;  %278 = vmatpush.msra.mxu1 %v219_v58  ;;  %v1253_v58 = vld [vmem:[#allocation5] sm:$0xff] }
  0xbe   :  { %v99_v41 = vpop.permute.xlu1 %98 }
  0xbf   :  { %v108_v61 = vsel %vm106_vm7, %v99_v41, %v101_v59  ;;  %v118_v2 = vpop.permute.xlu0 %117 }
  0xc0   :  { %v120_v3 = vsel %vm119_vm6, %v116_v25, %v118_v2  ;;  %v204_v0 = vmul.f32 %v108_v61, %v1197_v37 }
  0xc1   :  { %v209_v4 = vmul.f32 %v120_v3, %v1199_v60 }
  0xc2   :  { %302 = vmatpush.msra.mxu2 %v204_v0 }
  0xc3   :  { %321 = vmatpush.msra.mxu3 %v209_v4  ;;  %765 = vmatmul.msk.f32.vlgmr.msra.gmra.mxu2 %vm243_vm8, %v58_v1 }
  0xc6   :  { %v138_v15 = vpop.permute.xlu1 %137 }
  0xc7   :  { %v148_v23 = vsel %vm145_vm4, %v138_v15, %v1077_v34  ;;  %v149_v25 = vsel %vm145_vm4, %v1138_v8, %v138_v15  ;;  %v103_v27 = vpop.permute.xlu0 %102  ;;  %v210_v34 = vmul.f32 %v136_v18, %v1228_v29  ;;  %v211_v8 = vmul.f32 %v135_v20, %v1230_v30 }
  0xc8   :  { %v107_v44 = vsel %vm106_vm7, %v101_v59, %v103_v27  ;;  %v214_v6 = vmul.f32 %v149_v25, %v1211_v12  ;;  %v215_v24 = vmul.f32 %v148_v23, %v1213_v13  ;;  %v1255_v59 = vld [vmem:[#allocation5 + $0x8] sm:$0xff] }
  0xc9   :  { %v205_v45 = vmul.f32 %v107_v44, %v1215_v17 }
  0xca   :  { %259 = vmatpush.msra.mxu0 %v214_v6  ;;  %279 = vmatpush.msra.mxu1 %v215_v24  ;;  %v333_v24 = vld [vmem:[%s1539_s5] sm:$0xff] }
  0xcb   :  { %322 = vmatpush.msra.mxu3 %v205_v45 }
  0xcc   :  { %260 = vmatpush.msra.mxu0 %v210_v34  ;;  %280 = vmatpush.msra.mxu1 %v211_v8 }
  0xcd   :  { %766 = vmatmul.msk.f32.vlgmr.msra.gmra.mxu3 %vm243_vm8, %v58_v1 }
  0xce   :  { %v97_v46 = vpop.permute.xlu1 %96 }
  0xcf   :  { %v112_v51 = vpop.permute.xlu0 %111  ;;  %v109_v52 = vsel %vm106_vm7, %v97_v46, %v99_v41  ;;  %v110_v53 = vsel %vm106_vm7, %v103_v27, %v97_v46 }
  0xd0   :  { %v122_v54 = vsel %vm119_vm6, %v112_v51, %v1171_v40  ;;  %v123_v55 = vsel %vm119_vm6, %v118_v2, %v112_v51  ;;  %v202_v41 = vmul.f32 %v110_v53, %v1253_v58  ;;  %v203_v0 = vmul.f32 %v109_v52, %v1255_v59 }
  0xd1   :  { %v206_v61 = vmul.f32 %v123_v55, %v1240_v47  ;;  %v207_v3 = vmul.f32 %v122_v54, %v1242_v48 }
  0xd3   :  { %261 = vmatpush.msra.mxu0 %v206_v61  ;;  %281 = vmatpush.msra.mxu1 %v207_v3 }
  0xd5   :  { %262 = vmatpush.msra.mxu0 %v202_v41  ;;  %282 = vmatpush.msra.mxu1 %v203_v0 }
  0xd6   :  { %763 = vmatmul.msk.f32.vlgmr.msra.gmra.mxu0 %vm243_vm8, %v58_v1  ;;  %764 = vmatmul.msk.f32.vlgmr.msra.gmra.mxu1 %vm243_vm8, %v58_v1 }
  0xf7   :  { %v241_v40 = vpop.permute.xlu2 %240 }
 0x146   :  { %v304_v27 = vpop.f32.mrf.mxu2 }
 0x147   :  { %v305_v44 = vadd.f32 %v304_v27, %v241_v40 }
 0x149   :  { %v1284_v6 = vmax.f32 %v305_v44, 0.0 }
 0x150   :  { %v324_v23 = vpop.f32.mrf.mxu3 }
 0x151   :  { %v325_v1 = vadd.f32 %v324_v23, %v241_v40 }
 0x153   :  { %v264_v2 = vpop.f32.mrf.mxu0  ;;  %v284_v4 = vpop.f32.mrf.mxu1  ;;  %v330_v25 = vmax.f32 %v325_v1, 0.0 }
 0x154   :  { %v265_v5 = vadd.f32 %v264_v2, %v241_v40  ;;  %v285_v15 = vadd.f32 %v284_v4, %v241_v40 }
 0x156   :  { %v1263_v18 = vmax.f32 %v265_v5, 0.0  ;;  %v1265_v20 = vmax.f32 %v285_v15, 0.0 }
 0x158   :  { %373 = vrot.lane.b32.xlu2 %v1265_v20, %s917_s11  ;;  %409 = vrot.lane.b32.xlu1 %v1265_v20, %s914_s1 }
 0x159   :  { %419 = vrot.lane.b32.xlu0 %v1263_v18, %s913_s0 }
 0x160   :  { %397 = vrot.lane.b32.xlu2 %v1265_v20, %s915_s9  ;;  %349 = vrot.lane.b32.xlu1 %v1265_v20, %s919_s13 }
 0x161   :  { %407 = vrot.lane.b32.xlu0 %v1263_v18, %s914_s1 }
 0x168   :  { %425 = vrot.lane.b32.xlu2 %v330_v25, %s913_s0  ;;  %337 = vrot.lane.b32.xlu1 %v1265_v20, %s920_s14 }
 0x169   :  { %395 = vrot.lane.b32.xlu0 %v1263_v18, %s915_s9 }
 0x170   :  { %413 = vrot.lane.b32.xlu2 %v330_v25, %s914_s1  ;;  %423 = vrot.lane.b32.xlu1 %v1284_v6, %s913_s0 }
 0x171   :  { %383 = vrot.lane.b32.xlu0 %v1263_v18, %s916_s10 }
 0x178   :  { %401 = vrot.lane.b32.xlu2 %v330_v25, %s915_s9  ;;  %411 = vrot.lane.b32.xlu1 %v1284_v6, %s914_s1 }
 0x179   :  { %421 = vrot.lane.b32.xlu0 %v1265_v20, %s913_s0 }
 0x180   :  { %389 = vrot.lane.b32.xlu2 %v330_v25, %s916_s10  ;;  %399 = vrot.lane.b32.xlu1 %v1284_v6, %s915_s9 }
 0x181   :  { %361 = vrot.lane.b32.xlu0 %v1265_v20, %s918_s12 }
 0x188   :  { %365 = vrot.lane.b32.xlu2 %v330_v25, %s918_s12  ;;  %387 = vrot.lane.b32.xlu1 %v1284_v6, %s916_s10 }
 0x189   :  { %385 = vrot.lane.b32.xlu0 %v1265_v20, %s916_s10 }
 0x190   :  { %351 = vrot.lane.b32.xlu2 %v1284_v6, %s919_s13  ;;  %377 = vrot.lane.b32.xlu1 %v330_v25, %s917_s11 }
 0x191   :  { %375 = vrot.lane.b32.xlu0 %v1284_v6, %s917_s11 }
 0x198   :  { %339 = vrot.lane.b32.xlu2 %v1284_v6, %s920_s14  ;;  %363 = vrot.lane.b32.xlu1 %v1284_v6, %s918_s12 }
 0x199   :  { %353 = vrot.lane.b32.xlu0 %v330_v25, %s919_s13 }
 0x1a0   :  { %359 = vrot.lane.b32.xlu2 %v1263_v18, %s918_s12  ;;  %371 = vrot.lane.b32.xlu1 %v1263_v18, %s917_s11 }
 0x1a1   :  { %341 = vrot.lane.b32.xlu0 %v330_v25, %s920_s14 }
 0x1a8   :  { %469 = vperm.xlu2 %797, %v333_v24   ;;  %335 = vrot.lane.b32.xlu1 %v1263_v18, %s920_s14  ;;  %v450_v24 = vmul.f32 %v330_v25, %v1088_v39 }
 0x1a9   :  { %347 = vrot.lane.b32.xlu0 %v1263_v18, %s919_s13 }
 0x1b2   :  { %v1328_v45 = vpop.permute.xlu2 %373 }
 0x1ba   :  { %v398_v34 = vpop.permute.xlu2 %397 }
 0x1c2   :  { %v426_v8 = vpop.permute.xlu2 %425 }
 0x1ca   :  { %v410_v46 = vpop.permute.xlu1 %409  ;;  %v414_v54 = vpop.permute.xlu2 %413 }
 0x1cb   :  { %v420_v51 = vpop.permute.xlu0 %419 }
 0x1cc   :  { %v430_v52 = vsel %vm197_vm0, %v426_v8, %v420_v51 }
 0x1cd   :  { %v466_v53 = vmul.f32 %v430_v52, %v1044_v10 }
 0x1cf   :  { %559 = vmatpush.msrb.mxu3 %v466_v53 }
 0x1d2   :  { %v1333_v55 = vpop.permute.xlu1 %349  ;;  %v402_v0 = vpop.permute.xlu2 %401 }
 0x1d3   :  { %v408_v61 = vpop.permute.xlu0 %407 }
 0x1d4   :  { %v418_v3 = vsel %vm184_vm1, %v414_v54, %v408_v61  ;;  %v417_v52 = vsel %vm184_vm1, %v408_v61, %v410_v46 }
 0x1d5   :  { %v462_v41 = vmul.f32 %v418_v3, %v1050_v14 }
 0x1d7   :  { %560 = vmatpush.msrb.mxu3 %v462_v41 }
 0x1da   :  { %v1338_v40 = vpop.permute.xlu1 %337  ;;  %v390_v15 = vpop.permute.xlu2 %389 }
 0x1db   :  { %v396_v2 = vpop.permute.xlu0 %395 }
 0x1dc   :  { %v406_v4 = vsel %vm171_vm2, %v402_v0, %v396_v2  ;;  %v405_v61 = vsel %vm171_vm2, %v396_v2, %v398_v34 }
 0x1dd   :  { %v458_v10 = vmul.f32 %v406_v4, %v1069_v28 }
 0x1df   :  { %561 = vmatpush.msrb.mxu3 %v458_v10 }
 0x1e2   :  { %v424_v5 = vpop.permute.xlu1 %423  ;;  %v366_v4 = vpop.permute.xlu2 %365 }
 0x1e3   :  { %v427_v23 = vsel %vm197_vm0, %v424_v5, %v426_v8  ;;  %v384_v1 = vpop.permute.xlu0 %383 }
 0x1e4   :  { %v394_v14 = vsel %vm158_vm3, %v390_v15, %v384_v1  ;;  %v465_v27 = vmul.f32 %v427_v23, %v1052_v16 }
 0x1e5   :  { %v454_v44 = vmul.f32 %v394_v14, %v1086_v38 }
 0x1e6   :  { %536 = vmatpush.msrb.mxu2 %v465_v27  ;;  %v449_v27 = vmul.f32 %v1284_v6, %v1082_v36 }
 0x1e7   :  { %562 = vmatpush.msrb.mxu3 %v454_v44  ;;  %v448_v44 = vmul.f32 %v1265_v20, %v1175_v43 }
 0x1e9   :  { %563 = vmatpush.msrb.mxu3 %v450_v24 }
 0x1ea   :  { %v412_v28 = vpop.permute.xlu1 %411  ;;  %v352_v23 = vpop.permute.xlu2 %351 }
 0x1eb   :  { %v415_v8 = vsel %vm184_vm1, %v412_v28, %v414_v54  ;;  %v422_v53 = vpop.permute.xlu0 %421  ;;  %v416_v3 = vsel %vm184_vm1, %v410_v46, %v412_v28  ;;  %v459_v46 = vmul.f32 %v417_v52, %v1117_v56  ;;  %v356_v20 = vsel %vm119_vm6, %v1333_v55, %v352_v23 }
 0x1ec   :  { %v428_v16 = vsel %vm197_vm0, %v422_v53, %v424_v5  ;;  %v429_v38 = vsel %vm197_vm0, %v420_v51, %v422_v53  ;;  %v461_v39 = vmul.f32 %v415_v8, %v1061_v22  ;;  %v460_v54 = vmul.f32 %v416_v3, %v1119_v57 }
 0x1ed   :  { %v463_v25 = vmul.f32 %v429_v38, %v1104_v49  ;;  %v464_v41 = vmul.f32 %v428_v16, %v1106_v50  ;;  %v455_v51 = vmul.f32 %v405_v61, %v1127_v62  ;;  %v437_v3 = vmul.f32 %v356_v20, %v1169_v33 }
 0x1ee   :  { %537 = vmatpush.msrb.mxu2 %v461_v39 }
 0x1ef   :  { %490 = vmatpush.msrb.mxu0 %v463_v25  ;;  %513 = vmatpush.msrb.mxu1 %v464_v41 }
 0x1f1   :  { %491 = vmatpush.msrb.mxu0 %v459_v46  ;;  %514 = vmatpush.msrb.mxu1 %v460_v54 }
 0x1f2   :  { %v400_v22 = vpop.permute.xlu1 %399 }
 0x1f3   :  { %v403_v49 = vsel %vm171_vm2, %v400_v22, %v402_v0  ;;  %v404_v50 = vsel %vm171_vm2, %v398_v34, %v400_v22  ;;  %492 = vmatpush.msrb.mxu0 %v455_v51  ;;  %v362_v2 = vpop.permute.xlu0 %361  ;;  %v332_v22 = vld [vmem:[%s1538_s4 + $0x8] sm:$0xff] }
 0x1f4   :  { %v456_v10 = vmul.f32 %v404_v50, %v1129_v63  ;;  %v457_v56 = vmul.f32 %v403_v49, %v1067_v26 }
 0x1f6   :  { %515 = vmatpush.msrb.mxu1 %v456_v10  ;;  %538 = vmatpush.msrb.mxu2 %v457_v56 }
 0x1fa   :  { %v388_v57 = vpop.permute.xlu1 %387 }
 0x1fb   :  { %v391_v62 = vsel %vm158_vm3, %v388_v57, %v390_v15  ;;  %v386_v5 = vpop.permute.xlu0 %385  ;;  %v447_v15 = vmul.f32 %v1263_v18, %v1173_v42  ;;  %v340_v42 = vpop.permute.xlu2 %339  ;;  %v334_v18 = vld [vmem:[%s1539_s5 + $0x8] sm:$0xff] }
 0x1fc   :  { %v392_v0 = vsel %vm158_vm3, %v386_v5, %v388_v57  ;;  %v393_v34 = vsel %vm158_vm3, %v384_v1, %v386_v5  ;;  %v453_v14 = vmul.f32 %v391_v62, %v1080_v35  ;;  %474 = vperm.xlu0 %798, %v334_v18   ;;  %v344_v53 = vsel %vm106_vm7, %v1338_v40, %v340_v42 }
 0x1fd   :  { %v451_v63 = vmul.f32 %v393_v34, %v1165_v31  ;;  %v452_v26 = vmul.f32 %v392_v0, %v1167_v32  ;;  %v433_v39 = vmul.f32 %v344_v53, %v1197_v37 }
 0x1fe   :  { %539 = vmatpush.msrb.mxu2 %v453_v14 }
 0x1ff   :  { %493 = vmatpush.msrb.mxu0 %v451_v63  ;;  %516 = vmatpush.msrb.mxu1 %v452_v26 }
 0x200   :  { %540 = vmatpush.msrb.mxu2 %v449_v27 }
 0x201   :  { %494 = vmatpush.msrb.mxu0 %v447_v15  ;;  %517 = vmatpush.msrb.mxu1 %v448_v44 }
 0x202   :  { %v378_v35 = vpop.permute.xlu1 %377 }
 0x203   :  { %v376_v1 = vpop.permute.xlu0 %375  ;;  %v360_v38 = vpop.permute.xlu2 %359 }
 0x204   :  { %v379_v31 = vsel %vm145_vm4, %v376_v1, %v378_v35  ;;  %v380_v36 = vsel %vm145_vm4, %v1328_v45, %v376_v1  ;;  %v370_v25 = vsel %vm132_vm5, %v366_v4, %v360_v38  ;;  %v369_v37 = vsel %vm132_vm5, %v360_v38, %v362_v2 }
 0x205   :  { %v445_v32 = vmul.f32 %v380_v36, %v1140_v9  ;;  %v446_v6 = vmul.f32 %v379_v31, %v1142_v11 }
 0x207   :  { %541 = vmatpush.msrb.mxu2 %v445_v32  ;;  %564 = vmatpush.msrb.mxu3 %v446_v6 }
 0x20a   :  { %v364_v43 = vpop.permute.xlu1 %363 }
 0x20b   :  { %v367_v24 = vsel %vm132_vm5, %v364_v43, %v366_v4  ;;  %v368_v9 = vsel %vm132_vm5, %v362_v2, %v364_v43  ;;  %v354_v28 = vpop.permute.xlu0 %353  ;;  %v440_v4 = vmul.f32 %v369_v37, %v1230_v30  ;;  %v470_v7 = vpop.permute.xlu2 %469 }
 0x20c   :  { %v355_v11 = vsel %vm119_vm6, %v352_v23, %v354_v28  ;;  %v441_v52 = vmul.f32 %v368_v9, %v1155_v21  ;;  %v442_v8 = vmul.f32 %v367_v24, %v1153_v19  ;;  %v331_v21 = vld [vmem:[%s1538_s4] sm:$0xff]  ;;  %s922_s4 = smov [#allocation7]  }
 0x20d   :  { %v438_v16 = vmul.f32 %v355_v11, %v1199_v60  ;;  %s747_s24 = sshll.u32 %s922_s4, 4  ;;  %s748_s24 = int_to_ptr.vmem [resolvable:$true] %s747_s24 }
 0x20e   :  { %542 = vmatpush.msrb.mxu2 %v441_v52  ;;  %565 = vmatpush.msrb.mxu3 %v442_v8 }
 0x210   :  { %543 = vmatpush.msrb.mxu2 %v437_v3  ;;  %566 = vmatpush.msrb.mxu3 %v438_v16 }
 0x212   :  { %v372_v19 = vpop.permute.xlu1 %371  ;;  %544 = vmatpush.msrb.mxu2 %v433_v39 }
 0x213   :  { %v381_v33 = vsel %vm145_vm4, %v372_v19, %v1328_v45  ;;  %v382_v60 = vsel %vm145_vm4, %v378_v35, %v372_v19  ;;  %v342_v41 = vpop.permute.xlu0 %341  ;;  %771 = vmatmul.msk.f32.vlgmr.msrb.gmra.mxu2 %vm243_vm8, %v331_v21  ;;  %v439_v45 = vmul.f32 %v370_v25, %v1228_v29 }
 0x214   :  { %v343_v61 = vsel %vm106_vm7, %v340_v42, %v342_v41  ;;  %v443_v46 = vmul.f32 %v382_v60, %v1211_v12  ;;  %v444_v54 = vmul.f32 %v381_v33, %v1213_v13 }
 0x215   :  { %v434_v51 = vmul.f32 %v343_v61, %v1215_v17 }
 0x216   :  { %495 = vmatpush.msrb.mxu0 %v443_v46  ;;  %518 = vmatpush.msrb.mxu1 %v444_v54 }
 0x217   :  { %567 = vmatpush.msrb.mxu3 %v434_v51 }
 0x218   :  { %773 = vmatmul.msk.f32.vlgmr.msrb.gmra.mxu3 %vm243_vm8, %v331_v21  ;;  %496 = vmatpush.msrb.mxu0 %v439_v45 }
 0x219   :  { %519 = vmatpush.msrb.mxu1 %v440_v4 }
 0x21a   :  { %v336_v12 = vpop.permute.xlu1 %335 }
 0x21b   :  { %v348_v49 = vpop.permute.xlu0 %347  ;;  %772 = vmatmul.msk.f32.gmra.mxu2 %vm243_vm8, %v332_v22  ;;  %v345_v13 = vsel %vm106_vm7, %v336_v12, %v1338_v40  ;;  %v346_v17 = vsel %vm106_vm7, %v342_v41, %v336_v12 }
 0x21c   :  { %v357_v29 = vsel %vm119_vm6, %v348_v49, %v1333_v55  ;;  %v358_v30 = vsel %vm119_vm6, %v354_v28, %v348_v49  ;;  %v431_v10 = vmul.f32 %v346_v17, %v1253_v58  ;;  %v432_v40 = vmul.f32 %v345_v13, %v1255_v59 }
 0x21d   :  { %v435_v50 = vmul.f32 %v358_v30, %v1240_v47  ;;  %v436_v2 = vmul.f32 %v357_v29, %v1242_v48 }
 0x21f   :  { %497 = vmatpush.msrb.mxu0 %v435_v50  ;;  %520 = vmatpush.msrb.mxu1 %v436_v2 }
 0x220   :  { %774 = vmatmul.msk.f32.gmra.mxu3 %vm243_vm8, %v332_v22 }
 0x221   :  { %498 = vmatpush.msrb.mxu0 %v431_v10  ;;  %521 = vmatpush.msrb.mxu1 %v432_v40 }
 0x222   :  { %767 = vmatmul.msk.f32.vlgmr.msrb.gmra.mxu0 %vm243_vm8, %v331_v21  ;;  %769 = vmatmul.msk.f32.vlgmr.msrb.gmra.mxu1 %vm243_vm8, %v331_v21 }
 0x22a   :  { %768 = vmatmul.msk.f32.gmra.mxu0 %vm243_vm8, %v332_v22  ;;  %770 = vmatmul.msk.f32.gmra.mxu1 %vm243_vm8, %v332_v22 }
 0x26e   :  { %v475_v59 = vpop.permute.xlu0 %474 }
 0x296   :  { %v546_v47 = vpop.f32.mrf.mxu2 }
 0x297   :  { %v547_v48 = vadd.f32 %v546_v47, %v470_v7 }
 0x299   :  { %v577_v55 = vmax.f32 %v547_v48, 0.0 }
 0x29b   :  { %v777_v56 = vmul.f32 -1.442695, %v577_v55  ;;  %v569_v58 = vpop.f32.mrf.mxu3 }
 0x29c   :  { %v570_v57 = vadd.f32 %v569_v58, %v470_v7 }
 0x29d   :  { %799 = vpow2.f32 %v777_v56 }
 0x29e   :  { %v578_v62 = vmax.f32 %v570_v57, 0.0  ;;  %v549_v5 = vpop.f32.mrf.mxu2 }
 0x29f   :  { %v523_v23 = vpop.f32.mrf.mxu1  ;;  %v550_v0 = vadd.f32 %v549_v5, %v475_v59  ;;  %v500_v34 = vpop.f32.mrf.mxu0 }
 0x2a0   :  { %v778_v14 = vmul.f32 -1.442695, %v578_v62  ;;  %v524_v63 = vadd.f32 %v523_v23, %v470_v7  ;;  %v501_v26 = vadd.f32 %v500_v34, %v470_v7 }
 0x2a1   :  { %v581_v27 = vmax.f32 %v550_v0, 0.0 }
 0x2a2   :  { %801 = vpow2.f32 %v778_v14  ;;  %v576_v15 = vmax.f32 %v524_v63, 0.0  ;;  %v575_v44 = vmax.f32 %v501_v26, 0.0 }
 0x2a3   :  { %v800_v35 = vpop.eup %799  ;;  %v781_v1 = vmul.f32 -1.442695, %v581_v27  ;;  %v572_v31 = vpop.f32.mrf.mxu3 }
 0x2a4   :  { %v609_v36 = vadd.f32 1.0, %v800_v35  ;;  %v776_v32 = vmul.f32 -1.442695, %v576_v15  ;;  %v775_v6 = vmul.f32 -1.442695, %v575_v44  ;;  %v573_v42 = vadd.f32 %v572_v31, %v475_v59 }
 0x2a5   :  { %803 = vpow2.f32 %v781_v1 }
 0x2a6   :  { %805 = vrcp.f32 %v609_v36  ;;  %v582_v43 = vmax.f32 %v573_v42, 0.0  ;;  %v654_v21 = vand.u32 2147483647, %v609_v36  ;;  %v656_v19 = vand.u32 2147483648, %v609_v36 }
 0x2a7   :  { %807 = vpow2.f32 %v776_v32  ;;  %v503_v18 = vpop.f32.mrf.mxu0  ;;  %v526_v8 = vpop.f32.mrf.mxu1  ;;  %vm650_vm9 = vweird.f32 %v609_v36 }
 0x2a8   :  { %v802_v20 = vpop.eup %801  ;;  %809 = vpow2.f32 %v775_v6  ;;  %v504_v24 = vadd.f32 %v503_v18, %v475_v59  ;;  %v782_v28 = vmul.f32 -1.442695, %v582_v43  ;;  %v527_v41 = vadd.f32 %v526_v8, %v475_v59 }
 0x2a9   :  { %v1460_v9 = vadd.f32 1.0, %v802_v20  ;;  %vm1473_vm11 = vcmp.eq.f32.partialorder %v654_v21, 8.507059e+37  ;;  %v657_v22 = vor.u32 1.1754944e-38, %v656_v19 }
 0x2aa   :  { %v579_v11 = vmax.f32 %v504_v24, 0.0  ;;  %v580_v49 = vmax.f32 %v527_v41, 0.0 }
 0x2ab   :  { %v804_v52 = vpop.eup %803  ;;  %811 = vrcp.f32 %v1460_v9  ;;  %v669_v33 = vand.u32 2147483647, %v1460_v9  ;;  %v671_v61 = vand.u32 2147483648, %v1460_v9  ;;  %vm665_vm12 = vweird.f32 %v1460_v9 }
 0x2ac   :  { %v806_v53 = vpop.eup %805  ;;  %v1463_v3 = vadd.f32 1.0, %v804_v52  ;;  %813 = vpow2.f32 %v782_v28  ;;  %v779_v16 = vmul.f32 -1.442695, %v579_v11  ;;  %v780_v57 = vmul.f32 -1.442695, %v580_v49 }
 0x2ad   :  { %v808_v38 = vpop.eup %807  ;;  %v646_v39 = vmul.f32 %v806_v53, %v609_v36  ;;  %vm651_vm10 = vweird.f32 %v806_v53  ;;  %vm1480_vm13 = vcmp.eq.f32.partialorder %v669_v33, 8.507059e+37  ;;  %v672_v29 = vor.u32 1.1754944e-38, %v671_v61 }
 0x2ae   :  { %v810_v25 = vpop.eup %809  ;;  %v1466_v60 = vadd.f32 1.0, %v808_v38  ;;  %815 = vrcp.f32 %v1463_v3  ;;  %vm710_vm14 = vweird.f32 %v1463_v3  ;;  %vm652_vm15 = vmor %vm650_vm9, %vm651_vm10  ;;  %v714_v2 = vand.u32 2147483647, %v1463_v3 }
 0x2af   :  { %v647_v37 = vsub.f32 1.0, %v646_v39  ;;  %v1470_v46 = vadd.f32 1.0, %v810_v25  ;;  %817 = vpow2.f32 %v779_v16  ;;  %v716_v10 = vand.u32 2147483648, %v1463_v3 }
 0x2b0   :  { %819 = vrcp.f32 %v1466_v60  ;;  %vm635_vm1 = vweird.f32 %v1466_v60  ;;  %v639_v5 = vand.u32 2147483647, %v1466_v60  ;;  %v641_v23 = vand.u32 2147483648, %v1466_v60 }
 0x2b1   :  { %v812_v54 = vpop.eup %811  ;;  %v648_v51 = vmul.f32 %v806_v53, %v647_v37  ;;  %821 = vrcp.f32 %v1470_v46  ;;  %vm1498_vm2 = vcmp.eq.f32.partialorder %v714_v2, 8.507059e+37  ;;  %v624_v26 = vand.u32 2147483647, %v1470_v46 }
 0x2b2   :  { %v814_v4 = vpop.eup %813  ;;  %v661_v12 = vmul.f32 %v812_v54, %v1460_v9  ;;  %vm666_vm0 = vweird.f32 %v812_v54  ;;  %v626_v31 = vand.u32 2147483648, %v1470_v46  ;;  %v717_v43 = vor.u32 1.1754944e-38, %v716_v10 }
 0x2b3   :  { %v649_v13 = vadd.f32 %v806_v53, %v648_v51  ;;  %v1488_v40 = vadd.f32 1.0, %v814_v4  ;;  %vm667_vm3 = vmor %vm665_vm12, %vm666_vm0  ;;  %vm640_vm8 = vcmp.eq.f32.partialorder %v639_v5, 8.507059e+37  ;;  %v642_v28 = vor.u32 1.1754944e-38, %v641_v23 }
 0x2b4   :  { %v816_v30 = vpop.eup %815  ;;  %v662_v50 = vsub.f32 1.0, %v661_v12  ;;  %vm620_vm10 = vweird.f32 %v1470_v46  ;;  %vm625_vm12 = vcmp.eq.f32.partialorder %v624_v26, 8.507059e+37 }
 0x2b5   :  { %v818_v7 = vpop.eup %817  ;;  %v653_v47 = vsel %vm652_vm15, %v806_v53, %v649_v13  ;;  %v706_v48 = vmul.f32 %v816_v30, %v1463_v3  ;;  %823 = vrcp.f32 %v1488_v40  ;;  %vm711_vm4 = vweird.f32 %v816_v30 }
 0x2b6   :  { %v820_v55 = vpop.eup %819  ;;  %v658_v56 = vsel %vm1473_vm11, %v657_v22, %v653_v47  ;;  %v663_v58 = vmul.f32 %v812_v54, %v662_v50  ;;  %v1507_v44 = vadd.f32 1.0, %v818_v7  ;;  %825 = vpow2.f32 %v780_v57  ;;  %vm712_vm6 = vmor %vm710_vm14, %vm711_vm4 }
 0x2b7   :  { %v822_v59 = vpop.eup %821  ;;  %737 = vst [vmem:[#allocation7 + $0x10] sm:$0xff] %v658_v56  ;;  %v631_v62 = vmul.f32 %v820_v55, %v1466_v60  ;;  %v707_v0 = vsub.f32 1.0, %v706_v48  ;;  %vm636_vm5 = vweird.f32 %v820_v55  ;;  %v627_v53 = vor.u32 1.1754944e-38, %v626_v31 }
 0x2b8   :  { %v664_v34 = vadd.f32 %v812_v54, %v663_v58  ;;  %v616_v63 = vmul.f32 %v822_v59, %v1470_v46  ;;  %vm621_vm7 = vweird.f32 %v822_v59  ;;  %827 = vrcp.f32 %v1507_v44  ;;  %vm637_vm9 = vmor %vm635_vm1, %vm636_vm5 }
 0x2b9   :  { %v632_v27 = vsub.f32 1.0, %v631_v62  ;;  %v708_v15 = vmul.f32 %v816_v30, %v707_v0  ;;  %vm622_vm11 = vmor %vm620_vm10, %vm621_vm7  ;;  %v729_v21 = vand.u32 2147483647, %v1488_v40  ;;  %v731_v19 = vand.u32 2147483648, %v1488_v40 }
 0x2ba   :  { %v668_v35 = vsel %vm667_vm3, %v812_v54, %v664_v34  ;;  %v617_v1 = vsub.f32 1.0, %v616_v63  ;;  %vm725_vm14 = vweird.f32 %v1488_v40  ;;  %v686_v4 = vand.u32 2147483648, %v1507_v44 }
 0x2bb   :  { %v673_v36 = vsel %vm1480_vm13, %v672_v29, %v668_v35  ;;  %v633_v32 = vmul.f32 %v820_v55, %v632_v27  ;;  %v709_v6 = vadd.f32 %v816_v30, %v708_v15  ;;  %v824_v42 = vpop.eup %823  ;;  %v732_v46 = vor.u32 1.1754944e-38, %v731_v19 }
 0x2bc   :  { %738 = vst [vmem:[#allocation7 + $0x18] sm:$0xff] %v673_v36  ;;  %v618_v18 = vmul.f32 %v822_v59, %v617_v1  ;;  %v721_v9 = vmul.f32 %v824_v42, %v1488_v40  ;;  %v826_v16 = vpop.eup %825  ;;  %vm726_vm13 = vweird.f32 %v824_v42  ;;  %vm730_vm0 = vcmp.eq.f32.partialorder %v729_v21, 8.507059e+37 }
 0x2bd   :  { %v634_v20 = vadd.f32 %v820_v55, %v633_v32  ;;  %v713_v24 = vsel %vm712_vm6, %v816_v30, %v709_v6  ;;  %v612_v60 = vadd.f32 1.0, %v826_v16  ;;  %vm727_vm15 = vmor %vm725_vm14, %vm726_vm13  ;;  %v684_v12 = vand.u32 2147483647, %v1507_v44 }
 0x2be   :  { %v718_v11 = vsel %vm1498_vm2, %v717_v43, %v713_v24  ;;  %v619_v52 = vadd.f32 %v822_v59, %v618_v18  ;;  %v722_v3 = vsub.f32 1.0, %v721_v9  ;;  %v828_v41 = vpop.eup %827  ;;  %vm680_vm2 = vweird.f32 %v1507_v44 }
 0x2bf   :  { %v638_v8 = vsel %vm637_vm9, %v820_v55, %v634_v20  ;;  %741 = vst [vmem:[#allocation7 + $0x30] sm:$0xff] %v718_v11  ;;  %v676_v61 = vmul.f32 %v828_v41, %v1507_v44  ;;  %829 = vrcp.f32 %v612_v60  ;;  %vm681_vm1 = vweird.f32 %v828_v41 }
 0x2c0   :  { %v643_v38 = vsel %vm640_vm8, %v642_v28, %v638_v8  ;;  %v623_v39 = vsel %vm622_vm11, %v822_v59, %v619_v52  ;;  %v723_v33 = vmul.f32 %v824_v42, %v722_v3  ;;  %vm682_vm3 = vmor %vm680_vm2, %vm681_vm1  ;;  %v687_v17 = vor.u32 1.1754944e-38, %v686_v4 }
 0x2c1   :  { %736 = vst [vmem:[#allocation7 + $0x8] sm:$0xff] %v643_v38  ;;  %v628_v25 = vsel %vm625_vm12, %v627_v53, %v623_v39  ;;  %v677_v51 = vsub.f32 1.0, %v676_v61  ;;  %vm685_vm4 = vcmp.eq.f32.partialorder %v684_v12, 8.507059e+37  ;;  %v701_v10 = vand.u32 2147483648, %v612_v60 }
 0x2c2   :  { %735 = vst [vmem:[#allocation7] sm:$0xff] %v628_v25  ;;  %v724_v37 = vadd.f32 %v824_v42, %v723_v33  ;;  %v699_v7 = vand.u32 2147483647, %v612_v60  ;;  %vm695_vm6 = vweird.f32 %v612_v60 }
 0x2c3   :  { %v678_v22 = vmul.f32 %v828_v41, %v677_v51  ;;  %v702_v48 = vor.u32 1.1754944e-38, %v701_v10 }
 0x2c4   :  { %v728_v54 = vsel %vm727_vm15, %v824_v42, %v724_v37  ;;  %vm700_vm8 = vcmp.eq.f32.partialorder %v699_v7, 8.507059e+37 }
 0x2c5   :  { %v733_v45 = vsel %vm730_vm0, %v732_v46, %v728_v54  ;;  %v830_v49 = vpop.eup %829  ;;  %v679_v13 = vadd.f32 %v828_v41, %v678_v22 }
 0x2c6   :  { %742 = vst [vmem:[#allocation7 + $0x38] sm:$0xff] %v733_v45  ;;  %v691_v29 = vmul.f32 %v830_v49, %v612_v60  ;;  %vm696_vm5 = vweird.f32 %v830_v49 }
 0x2c7   :  { %v683_v30 = vsel %vm682_vm3, %v828_v41, %v679_v13  ;;  %vm697_vm7 = vmor %vm695_vm6, %vm696_vm5 }
 0x2c8   :  { %v688_v50 = vsel %vm685_vm4, %v687_v17, %v683_v30  ;;  %v692_v2 = vsub.f32 1.0, %v691_v29 }
 0x2c9   :  { %739 = vst [vmem:[#allocation7 + $0x20] sm:$0xff] %v688_v50 }
 0x2ca   :  { %v693_v40 = vmul.f32 %v830_v49, %v692_v2 }
 0x2cc   :  { %v694_v47 = vadd.f32 %v830_v49, %v693_v40 }
 0x2ce   :  { %v698_v55 = vsel %vm697_vm7, %v830_v49, %v694_v47 }
 0x2cf   :  { %v703_v56 = vsel %vm700_vm8, %v702_v48, %v698_v55 }
 0x2d0   :  { %740 = vst [vmem:[#allocation7 + $0x28] sm:$0xff] %v703_v56 }
 0x2d1   :  { %755 = dma.vmem_to_hbm [thread:$0]  %s748_s24, 1024, %s750_s27, [#allocation4], %s911_s7, %s911_s7, %s912_s8  }
 0x2d2   :  { %907 = dma.done.wait [#allocation4], 1024  }
 0x2d3   :  { %908 = vsyncadd [#allocation4], 4294966272 }
 0x2d4   :  { %760 = vsyncpa [#allocation3], 1 }
 0x2d5   :  { %761 = vsyncpa [#allocation6], 1 }
 0x2d6   :  { %762 = vsyncpa [#allocation4], 1 }

</bundles_post_ra>
